<compile_context>
chip_gen: v5e
topology: v5e:2x2
jax: 0.10.0
libtpu: 0.0.40
codegen_flags: <defaults>
</compile_context>

<pallas_src>
import jax
import jax.numpy as jnp
from jax.experimental import pallas as pl
from jax.experimental.pallas import tpu as pltpu


def _transpose_kernel(x_ref, o_ref):
    # Whole-tile transpose of one (TM, TN) VMEM block -> (TN, TM).
    o_ref[...] = jnp.transpose(x_ref[...], (1, 0))


def _pick_tile(dim: int, preferred: int = 512) -> int:
    """Largest 128-multiple tile <= `preferred` that evenly divides `dim`;
    falls back to the full extent (exempt from the (8,128) rule)."""
    t = preferred
    while t >= 128:
        if dim % t == 0:
            return t
        t //= 2
    return dim


def dummy_forward(x: jax.Array) -> jax.Array:
    # torch._assert(x.dim() == 2, 'requires 2D tensor input') -> static check.
    assert x.ndim == 2, "requires 2D tensor input"
    M, N = x.shape
    tm = _pick_tile(M)
    tn = _pick_tile(N)
    grid = (M // tm, N // tn)
    dtype_bytes = jnp.dtype(x.dtype).itemsize

    return pl.pallas_call(
        _transpose_kernel,
        out_shape=jax.ShapeDtypeStruct((N, M), x.dtype),
        grid_spec=pl.GridSpec(
            grid=grid,
            # Input tile (TM, TN) at block (i, j); output tile (TN, TM) at
            # block (j, i).  TM/TN are 128-multiples (or full extents), so the
            # output block's last dim is lane-dense -> unmasked stores.
            in_specs=[pl.BlockSpec((tm, tn), lambda i, j: (i, j))],
            out_specs=pl.BlockSpec((tn, tm), lambda i, j: (j, i)),
        ),
        compiler_params=pltpu.CompilerParams(
            # Tiles are independent: shard across both TCs on v7x.
            dimension_semantics=("parallel", "parallel"),
        ),
        cost_estimate=pl.CostEstimate(
            flops=0,
            transcendentals=0,
            bytes_accessed=2 * M * N * dtype_bytes,
        ),
    )(x)


if __name__ == "__main__":
    key = jax.random.PRNGKey(0)

    # Small 2D input consistent with the module's forward (seq=8, hidden=128).
    x_small = jax.random.normal(key, (8, 128), dtype=jnp.float32)
    out_small = jax.block_until_ready(dummy_forward(x_small))
    ref_small = jnp.transpose(x_small, (1, 0))
    assert out_small.shape == (128, 8)
    assert out_small.dtype == x_small.dtype
    assert bool(jnp.array_equal(out_small, ref_small))

    # Secondary check that exercises the multi-tile (pipelined) path:
    # tiles (512, 128) -> grid (2, 3).
    x_big = jax.random.normal(jax.random.PRNGKey(1), (1024, 384), dtype=jnp.float32)
    out_big = jax.block_until_ready(dummy_forward(x_big))
    ref_big = jnp.transpose(x_big, (1, 0))
    assert out_big.shape == (384, 1024)
    assert bool(jnp.array_equal(out_big, ref_big))

    print("KERNEL_OK")
</pallas_src>

<mosaic_0001>
module attributes {stable_mosaic.version = 11 : i64} {
  func.func @_transpose_kernel(%arg0: i32, %arg1: i32, %arg2: memref<8x128xf32, #tpu.memory_space<vmem>>, %arg3: memref<128x8xf32, #tpu.memory_space<vmem>>) attributes {dimension_semantics = [#tpu.dimension_semantics<parallel>, #tpu.dimension_semantics<parallel>], iteration_bounds = array<i64: 1, 1>, scalar_prefetch = 0 : i64, scratch_operands = 0 : i64, tpu.core_type = #tpu.core_type<tc>, window_params = [{transform_indices = @transform_0, window_bounds = array<i64: 8, 128>}, {transform_indices = @transform_1, window_bounds = array<i64: 128, 8>}]} {
    %c0 = arith.constant 0 : index
    %c0_0 = arith.constant 0 : index
    %0 = vector.load %arg2[%c0, %c0_0] : memref<8x128xf32, #tpu.memory_space<vmem>>, vector<8x128xf32>
    %1 = tpu.transpose %0, [1, 0] : vector<8x128xf32> -> vector<128x8xf32>
    %c0_1 = arith.constant 0 : index
    %c0_2 = arith.constant 0 : index
    %2 = vector.load %arg3[%c0_1, %c0_2] : memref<128x8xf32, #tpu.memory_space<vmem>>, vector<128x8xf32>
    tpu.vector_store %arg3[%c0_1, %c0_2], %1 {strides = array<i32>} : memref<128x8xf32, #tpu.memory_space<vmem>>, vector<128x8xf32>,
    return
  }
  func.func @transform_0(%arg0: i32, %arg1: i32) -> (i32, i32) {
    %c0_i32 = arith.constant 0 : i32
    return %arg0, %arg1 : i32, i32
  }
  func.func @transform_1(%arg0: i32, %arg1: i32) -> (i32, i32) {
    %c0_i32 = arith.constant 0 : i32
    return %arg1, %arg0 : i32, i32
  }
}

</mosaic_0001>

<bundles_post_ra>
// kernel: tpu_custom_call.1
= control target key start
LH: loop header
LB: loop body
LE: loop exit
PB: predicated region body
PF: predicated region fallthrough
CT: control target
= control target key end

     0   :  { %6 = vsyncpa [#allocation3], 0  ;;  %s105_s9 = smov [#allocation2]   ;;  %s183_s0 = inlined_call_operand.hbm [shape: f32[8,128], index: 0, kind: input, shape index: {}]   ;;  %s184_s1 = inlined_call_operand.vmem [shape: f32[128,8], index: 1, kind: output, shape index: {}]  }
   0x1   :  { %s12_s8 = sshll.u32 %s183_s0, 4  ;;  %s14_s10 = sshll.u32 %s105_s9, 4  ;;  %s13_s8 = int_to_ptr.hbm [resolvable:$true] %s12_s8  ;;  %s15_s10 = int_to_ptr.vmem [resolvable:$true] %s14_s10 }
   0x2   :  { %17 = dma.hbm_to_vmem [thread:$0]  %s13_s8, 128, %s15_s10, [#allocation3]  }
   0x3   :  { %103 = dma.done.wait [#allocation3], 128  }
   0x4   :  { %104 = vsyncadd [#allocation3], 4294967168  ;;  %v22_v0 = vld [vmem:[#allocation2] sm:$0xff]  ;;  %vm55_vm0 = vcmask 64512  }
   0x5   :  { %23 = vxpose.xlu0.b32.start.end [1/1] (short) %v22_v0, 128 }
  0xa9   :  { %v39_v1 = vpop.trf.xlu0 }
  0xaa   :  { %56 = vst.msk [vmem:[%s184_s1] sm:$0xff] %vm55_vm0, %v39_v1 }
  0xb1   :  { %v40_v2 = vpop.trf.xlu0 }
  0xb2   :  { %57 = vst.msk [vmem:[%s184_s1 + $0x8] sm:$0xff] %vm55_vm0, %v40_v2 }
  0xb9   :  { %v41_v3 = vpop.trf.xlu0 }
  0xba   :  { %58 = vst.msk [vmem:[%s184_s1 + $0x10] sm:$0xff] %vm55_vm0, %v41_v3 }
  0xc1   :  { %v42_v4 = vpop.trf.xlu0 }
  0xc2   :  { %59 = vst.msk [vmem:[%s184_s1 + $0x18] sm:$0xff] %vm55_vm0, %v42_v4 }
  0xc9   :  { %v43_v5 = vpop.trf.xlu0 }
  0xca   :  { %60 = vst.msk [vmem:[%s184_s1 + $0x20] sm:$0xff] %vm55_vm0, %v43_v5 }
  0xd1   :  { %v44_v6 = vpop.trf.xlu0 }
  0xd2   :  { %61 = vst.msk [vmem:[%s184_s1 + $0x28] sm:$0xff] %vm55_vm0, %v44_v6 }
  0xd9   :  { %v45_v7 = vpop.trf.xlu0 }
  0xda   :  { %62 = vst.msk [vmem:[%s184_s1 + $0x30] sm:$0xff] %vm55_vm0, %v45_v7 }
  0xe1   :  { %v46_v8 = vpop.trf.xlu0 }
  0xe2   :  { %63 = vst.msk [vmem:[%s184_s1 + $0x38] sm:$0xff] %vm55_vm0, %v46_v8 }
  0xe9   :  { %v47_v9 = vpop.trf.xlu0 }
  0xea   :  { %64 = vst.msk [vmem:[%s184_s1 + $0x40] sm:$0xff] %vm55_vm0, %v47_v9 }
  0xf1   :  { %v48_v10 = vpop.trf.xlu0 }
  0xf2   :  { %65 = vst.msk [vmem:[%s184_s1 + $0x48] sm:$0xff] %vm55_vm0, %v48_v10 }
  0xf9   :  { %v49_v11 = vpop.trf.xlu0 }
  0xfa   :  { %66 = vst.msk [vmem:[%s184_s1 + $0x50] sm:$0xff] %vm55_vm0, %v49_v11 }
 0x101   :  { %v50_v12 = vpop.trf.xlu0 }
 0x102   :  { %67 = vst.msk [vmem:[%s184_s1 + $0x58] sm:$0xff] %vm55_vm0, %v50_v12 }
 0x109   :  { %v51_v13 = vpop.trf.xlu0 }
 0x10a   :  { %68 = vst.msk [vmem:[%s184_s1 + $0x60] sm:$0xff] %vm55_vm0, %v51_v13 }
 0x111   :  { %v52_v14 = vpop.trf.xlu0 }
 0x112   :  { %69 = vst.msk [vmem:[%s184_s1 + $0x68] sm:$0xff] %vm55_vm0, %v52_v14 }
 0x119   :  { %v53_v15 = vpop.trf.xlu0 }
 0x11a   :  { %70 = vst.msk [vmem:[%s184_s1 + $0x70] sm:$0xff] %vm55_vm0, %v53_v15 }
 0x121   :  { %v54_v16 = vpop.trf.xlu0 }
 0x122   :  { %71 = vst.msk [vmem:[%s184_s1 + $0x78] sm:$0xff] %vm55_vm0, %v54_v16 }
 0x123   :  { %76 = vsyncpa [#allocation3], 1 }

</bundles_post_ra>
